<compile_context>
chip_gen: v7x
topology: tpu7x:2x2x1
jax: 0.10.0
libtpu: 0.0.40
codegen_flags: <defaults>
</compile_context>

<pallas_src>
import math

import jax
import jax.numpy as jnp
from jax import lax
from jax.experimental import pallas as pl
from jax.experimental.pallas import tpu as pltpu


_INV_SQRT2 = 1.0 / math.sqrt(2.0)


def _gelu_exact(y):
    # Exact GELU (matches HF ACT2FN["gelu"] / torch.nn.GELU default):
    # 0.5 * y * (1 + erf(y / sqrt(2)))
    # TODO(synk): only the "gelu" activation is implemented; other
    # config.hidden_act choices would need their own epilogue.
    return 0.5 * y * (1.0 + lax.erf(y * _INV_SQRT2))


def _ffn_single_pass_kernel(x_ref, w_ref, b_ref, o_ref):
    # grid = (Mp//tm, Ip//tn); whole K reduction in one MXU pass, no scratch.
    # x is loaded in its native dtype and cast to the MXU operand dtype here
    # (free VPU work), avoiding a wrapper-side HBM cast pass over x.
    x = x_ref[...].astype(w_ref.dtype)
    y = jnp.dot(x, w_ref[...], preferred_element_type=jnp.float32)
    y = y + b_ref[...].astype(jnp.float32)
    o_ref[...] = _gelu_exact(y).astype(o_ref.dtype)


def _ffn_ksplit_kernel(x_ref, w_ref, b_ref, o_ref, acc_ref):
    # grid = (Mp//tm, Ip//tn, Hp//tk); reduction axis (k) last.
    k = pl.program_id(2)

    @pl.when(k == 0)
    def _():
        # Fold the bias into the accumulator init (saves epilogue VALU work).
        acc_ref[...] = jnp.broadcast_to(
            b_ref[...].astype(jnp.float32), acc_ref.shape
        )

    x = x_ref[...].astype(w_ref.dtype)
    acc_ref[...] += jnp.dot(x, w_ref[...], preferred_element_type=jnp.float32)

    @pl.when(k == pl.num_programs(2) - 1)
    def _():
        o_ref[...] = _gelu_exact(acc_ref[...]).astype(o_ref.dtype)


def _round_up(a, b):
    return ((a + b - 1) // b) * b


def _pick_tile(size, cap, align):
    """Largest halving-of-cap tile <= cap that divides the align-rounded size,
    so padding and output slicing are no-ops; falls back to cap."""
    padded = _round_up(size, align)
    t = cap
    while t >= align:
        if t <= padded and padded % t == 0:
            return t
        t //= 2
    return min(cap, padded)


def _vmem_estimate(tm, tn, tk, nk, x_bytes, w_bytes, o_bytes):
    return (
        2 * tm * tk * x_bytes        # double-buffered activation tiles (native dtype)
        + 2 * tk * tn * w_bytes      # double-buffered weight tiles (MXU dtype)
        + 2 * tm * tn * o_bytes      # double-buffered output tiles
        + (tm * tn * 4 if nk > 1 else 0)   # f32 accumulator scratch (K-split only)
        + 2 * tn * 4                 # bias tiles
    )


def deberta_v2_intermediate(
    hidden_states,
    weight_t,
    bias,
    *,
    tm=None,
    tn=None,
    tk=None,
    compute_dtype=jnp.bfloat16,
    out_dtype=None,
):
    """hidden_states: [B, S, H]; weight_t: [H, I] (transposed vs nn.Linear's
    [I, H]); bias: [I]. Returns [B, S, I].

    compute_dtype: MXU operand dtype (default bf16, f32 accumulation).
                   Pass None to keep the input dtype on the MXU.
    out_dtype:     output dtype (default: hidden_states.dtype). Pass bf16 to
                   halve output HBM traffic when the consumer accepts it.
    """
    orig_dtype = hidden_states.dtype
    out_dt = jnp.dtype(orig_dtype) if out_dtype is None else jnp.dtype(out_dtype)
    B, S, H = hidden_states.shape
    H2, I = weight_t.shape
    assert H == H2, "weight must be [hidden_size, intermediate_size]"
    M = B * S

    mxu_dtype = (
        jnp.dtype(compute_dtype) if compute_dtype is not None else jnp.dtype(orig_dtype)
    )

    x_bytes = jnp.dtype(orig_dtype).itemsize
    w_bytes = mxu_dtype.itemsize
    o_bytes = out_dt.itemsize

    # Sublane packing of the M axis: bf16 packs 16 rows per vreg, f32 packs 8.
    sub_m = 16 if (w_bytes < 4 or o_bytes < 4) else 8

    # ---- tile selection: lane/sublane aligned, divisor-preferring ----
    tm = tm if tm is not None else _pick_tile(M, 2048, sub_m)
    tn = tn if tn is not None else _pick_tile(I, 512, 128)
    tk = tk if tk is not None else _pick_tile(H, 2048, 128)
    tm = _round_up(tm, sub_m)
    tn = _round_up(tn, 128)
    tk = _round_up(tk, 128)

    # ---- VMEM budget: leave headroom, esp. on v7x (64 MiB physical) ----
    try:
        cap = int(getattr(pltpu.get_tpu_info(), "vmem_capacity_bytes", 0)) or (64 << 20)
    except Exception:  # pragma: no cover - conservative fallback
        cap = 64 << 20
    budget = min(int(0.70 * cap), 48 << 20)

    def est(tm_, tn_, tk_):
        nk_ = _round_up(H, tk_) // tk_
        return _vmem_estimate(tm_, tn_, tk_, nk_, x_bytes, w_bytes, o_bytes)

    # Shrink tiles (tm first, then tn, then tk) until the footprint fits.
    while est(tm, tn, tk) > budget and tm > 4 * sub_m:
        tm = _round_up(tm // 2, sub_m)
    while est(tm, tn, tk) > budget and tn > 128:
        tn = _round_up(tn // 2, 128)
    while est(tm, tn, tk) > budget and tk > 512:
        tk = _round_up(tk // 2, 128)

    Mp = _round_up(M, tm)
    Ip = _round_up(I, tn)
    Hp = _round_up(H, tk)
    nk = Hp // tk

    # ---- operand prep ----
    # Activation stays in its native dtype (cast happens inside the kernel).
    x2d = hidden_states.reshape(M, H)
    # Weight is a parameter: cast once outside (amortized across calls).
    w2d = weight_t if weight_t.dtype == mxu_dtype else weight_t.astype(mxu_dtype)
    b2d = bias.astype(jnp.float32).reshape(1, I)

    if (Mp, Hp) != (M, H):
        x2d = jnp.pad(x2d, ((0, Mp - M), (0, Hp - H)))
    if (Hp, Ip) != (H, I):
        w2d = jnp.pad(w2d, ((0, Hp - H), (0, Ip - I)))
    if Ip != I:
        b2d = jnp.pad(b2d, ((0, 0), (0, Ip - I)))

    vmem_est = est(tm, tn, tk)
    vmem_limit_bytes = None
    if vmem_est > (12 << 20):
        # v5e's scoped default is only 16 MiB -> raise explicitly, but never
        # past the headroom budget (~48 MiB on v7x).
        vmem_limit_bytes = min(budget, max(32 << 20, int(1.5 * vmem_est)))

    if nk == 1:
        # Single K pass: no accumulator scratch, 2-D fully-parallel grid
        # (shards across both TensorCores on v7x).
        grid = (Mp // tm, Ip // tn)
        out2d = pl.pallas_call(
            _ffn_single_pass_kernel,
            out_shape=jax.ShapeDtypeStruct((Mp, Ip), out_dt),
            grid_spec=pltpu.PrefetchScalarGridSpec(
                num_scalar_prefetch=0,
                grid=grid,
                in_specs=[
                    pl.BlockSpec((tm, tk), lambda i, j: (i, 0)),   # x tile (native dtype)
                    pl.BlockSpec((tk, tn), lambda i, j: (0, j)),   # weight tile
                    pl.BlockSpec((1, tn), lambda i, j: (0, j)),    # bias tile
                ],
                out_specs=pl.BlockSpec((tm, tn), lambda i, j: (i, j)),
            ),
            compiler_params=pltpu.CompilerParams(
                dimension_semantics=("parallel", "parallel"),
                vmem_limit_bytes=vmem_limit_bytes,
            ),
        )(x2d, w2d, b2d)
    else:
        # K-split: f32 accumulator scratch, reduction axis last ("arbitrary").
        grid = (Mp // tm, Ip // tn, nk)
        out2d = pl.pallas_call(
            _ffn_ksplit_kernel,
            out_shape=jax.ShapeDtypeStruct((Mp, Ip), out_dt),
            grid_spec=pltpu.PrefetchScalarGridSpec(
                num_scalar_prefetch=0,
                grid=grid,
                in_specs=[
                    pl.BlockSpec((tm, tk), lambda i, j, k: (i, k)),   # x tile
                    pl.BlockSpec((tk, tn), lambda i, j, k: (k, j)),   # weight tile
                    pl.BlockSpec((1, tn), lambda i, j, k: (0, j)),    # bias tile
                ],
                out_specs=pl.BlockSpec((tm, tn), lambda i, j, k: (i, j)),
                scratch_shapes=[pltpu.VMEM((tm, tn), jnp.float32)],
            ),
            compiler_params=pltpu.CompilerParams(
                dimension_semantics=("parallel", "parallel", "arbitrary"),
                vmem_limit_bytes=vmem_limit_bytes,
            ),
        )(x2d, w2d, b2d)

    if (Mp, Ip) != (M, I):
        out2d = out2d[:M, :I]
    return out2d.reshape(B, S, I)


def _reference(hidden_states, weight_t, bias):
    y = jnp.einsum("bsh,hi->bsi", hidden_states, weight_t) + bias
    return _gelu_exact(y)


if __name__ == "__main__":
    key = jax.random.PRNGKey(0)
    k_x, k_w, k_b, k_x2, k_w2, k_b2 = jax.random.split(key, 6)

    # Small config consistent with the module: hidden_size=32, intermediate_size=64.
    B, S, H, I = 2, 8, 32, 64
    hidden_states = jax.random.normal(k_x, (B, S, H), dtype=jnp.float32)
    # PyTorch nn.Linear stores weight as [I, H]; kernel takes the transposed [H, I].
    weight_t = jax.random.normal(k_w, (H, I), dtype=jnp.float32) * (1.0 / math.sqrt(H))
    bias = jax.random.normal(k_b, (I,), dtype=jnp.float32) * 0.02

    ref = _reference(hidden_states, weight_t, bias)

    # 1) Default path: native-dtype x with in-kernel bf16 cast, bf16 weight,
    #    f32 accumulation, single K pass.
    out_bf16 = deberta_v2_intermediate(hidden_states, weight_t, bias)
    out_bf16 = jax.block_until_ready(out_bf16)
    assert out_bf16.shape == (B, S, I)
    assert out_bf16.dtype == hidden_states.dtype
    assert jnp.allclose(out_bf16, ref, atol=3e-2, rtol=3e-2)

    # 2) Full-precision path (compute_dtype=None): exact match to reference.
    out_f32 = deberta_v2_intermediate(
        hidden_states, weight_t, bias, compute_dtype=None
    )
    out_f32 = jax.block_until_ready(out_f32)
    assert jnp.allclose(out_f32, ref, atol=1e-5, rtol=1e-5)

    # 3) bf16 output option (halves output HBM traffic on memory-bound chips).
    out_lo = deberta_v2_intermediate(
        hidden_states, weight_t, bias, out_dtype=jnp.bfloat16
    )
    out_lo = jax.block_until_ready(out_lo)
    assert out_lo.dtype == jnp.bfloat16
    assert jnp.allclose(out_lo.astype(jnp.float32), ref, atol=5e-2, rtol=5e-2)

    # 4) Exercise the K-split accumulator path (tk < H) and a multi-block M grid.
    H2, I2 = 256, 64
    hs2 = jax.random.normal(k_x2, (B, S, H2), dtype=jnp.float32)
    wt2 = jax.random.normal(k_w2, (H2, I2), dtype=jnp.float32) * (1.0 / math.sqrt(H2))
    b2 = jax.random.normal(k_b2, (I2,), dtype=jnp.float32) * 0.02
    out_ks = deberta_v2_intermediate(
        hs2, wt2, b2, tm=8, tn=128, tk=128, compute_dtype=None
    )
    out_ks = jax.block_until_ready(out_ks)
    ref2 = _reference(hs2, wt2, b2)
    assert jnp.allclose(out_ks, ref2, atol=1e-5, rtol=1e-5)

    print("KERNEL_OK")
</pallas_src>

<mosaic_0001>
module attributes {stable_mosaic.version = 11 : i64} {
  func.func @_ffn_single_pass_kernel(%arg0: i32, %arg1: i32, %arg2: memref<16x128xf32, #tpu.memory_space<vmem>>, %arg3: memref<128x128xbf16, #tpu.memory_space<vmem>>, %arg4: memref<1x128xf32, #tpu.memory_space<vmem>>, %arg5: memref<16x128xf32, #tpu.memory_space<vmem>>) attributes {dimension_semantics = [#tpu.dimension_semantics<parallel>, #tpu.dimension_semantics<parallel>], iteration_bounds = array<i64: 1, 1>, scalar_prefetch = 0 : i64, scratch_operands = 0 : i64, tpu.core_type = #tpu.core_type<tc>, window_params = [{transform_indices = @transform_0, window_bounds = array<i64: 16, 128>}, {transform_indices = @transform_1, window_bounds = array<i64: 128, 128>}, {transform_indices = @transform_2, window_bounds = array<i64: 1, 128>}, {transform_indices = @transform_3, window_bounds = array<i64: 16, 128>}]} {
    %c0 = arith.constant 0 : index
    %c0_0 = arith.constant 0 : index
    %0 = vector.load %arg2[%c0, %c0_0] : memref<16x128xf32, #tpu.memory_space<vmem>>, vector<16x128xf32>
    %1 = arith.truncf %0 : vector<16x128xf32> to vector<16x128xbf16>
    %c0_1 = arith.constant 0 : index
    %c0_2 = arith.constant 0 : index
    %2 = vector.load %arg3[%c0_1, %c0_2] : memref<128x128xbf16, #tpu.memory_space<vmem>>, vector<128x128xbf16>
    %cst = arith.constant dense<0.000000e+00> : vector<16x128xf32>
    %3 = tpu.matmul %1, %2, %cst {dimension_numbers = #tpu.dot_dimension_numbers<[1], [0], [0], [1], [0, 0, 1, 1], [], []>} : vector<16x128xbf16>, vector<128x128xbf16>, vector<16x128xf32> -> vector<16x128xf32>
    %c0_3 = arith.constant 0 : index
    %c0_4 = arith.constant 0 : index
    %4 = vector.load %arg4[%c0_3, %c0_4] : memref<1x128xf32, #tpu.memory_space<vmem>>, vector<1x128xf32>
    %5 = vector.broadcast %4 : vector<1x128xf32> to vector<16x128xf32>
    %6 = arith.addf %3, %5 : vector<16x128xf32>
    %cst_5 = arith.constant 5.000000e-01 : f32
    %7 = vector.broadcast %cst_5 : f32 to vector<16x128xf32>
    %8 = arith.mulf %7, %6 : vector<16x128xf32>
    %cst_6 = arith.constant 0.707106769 : f32
    %9 = vector.broadcast %cst_6 : f32 to vector<16x128xf32>
    %10 = arith.mulf %6, %9 : vector<16x128xf32>
    %11 = math.erf %10 : vector<16x128xf32>
    %cst_7 = arith.constant 1.000000e+00 : f32
    %12 = vector.broadcast %cst_7 : f32 to vector<16x128xf32>
    %13 = arith.addf %12, %11 : vector<16x128xf32>
    %14 = arith.mulf %8, %13 : vector<16x128xf32>
    %c0_8 = arith.constant 0 : index
    %c0_9 = arith.constant 0 : index
    %15 = vector.load %arg5[%c0_8, %c0_9] : memref<16x128xf32, #tpu.memory_space<vmem>>, vector<16x128xf32>
    tpu.vector_store %arg5[%c0_8, %c0_9], %14 {strides = array<i32>} : memref<16x128xf32, #tpu.memory_space<vmem>>, vector<16x128xf32>,
    return
  }
  func.func @transform_0(%arg0: i32, %arg1: i32) -> (i32, i32) {
    %c0_i32 = arith.constant 0 : i32
    %c0_i32_0 = arith.constant 0 : i32
    return %arg0, %c0_i32 : i32, i32
  }
  func.func @transform_1(%arg0: i32, %arg1: i32) -> (i32, i32) {
    %c0_i32 = arith.constant 0 : i32
    %c0_i32_0 = arith.constant 0 : i32
    return %c0_i32, %arg1 : i32, i32
  }
  func.func @transform_2(%arg0: i32, %arg1: i32) -> (i32, i32) {
    %c0_i32 = arith.constant 0 : i32
    %c0_i32_0 = arith.constant 0 : i32
    return %c0_i32, %arg1 : i32, i32
  }
  func.func @transform_3(%arg0: i32, %arg1: i32) -> (i32, i32) {
    %c0_i32 = arith.constant 0 : i32
    return %arg0, %arg1 : i32, i32
  }
}

</mosaic_0001>

<bundles_post_ra>
// kernel: tpu_custom_call.1
= control target key start
LH: loop header
LB: loop body
LE: loop exit
PB: predicated region body
PF: predicated region fallthrough
CT: control target
= control target key end

     0   :  { %8 = vsyncpa [#allocation3], 0  ;;  %s394_s0 = inlined_call_operand.hbm [shape: f32[16,128], index: 0, kind: input, shape index: {}]   ;;  %s395_s1 = inlined_call_operand.hbm [shape: bf16[128,128], index: 1, kind: input, shape index: {}]   ;;  %s396_s2 = inlined_call_operand.vmem [shape: f32[1,128], index: 2, kind: input, shape index: {}]   ;;  %s397_s3 = inlined_call_operand.hbm [shape: f32[16,128], index: 3, kind: output, shape index: {}]  }
   0x1   :  { %9 = vsyncpa [#allocation6], 0 }
   0x2   :  { %10 = vsyncpa [#allocation4], 0  ;;  %s320_s12 = smov [#allocation2]   ;;  %s248_s16 = scalar_lea.hbm %s394_s0, 256 }
   0x3   :  { %s16_s13 = sshll.u32 %s320_s12, 4  ;;  %p249_p0 = scmp.ne.s32.totalorder %s394_s0, %s248_s16  ;;  %s17_s13 = int_to_ptr.vmem [resolvable:$true] %s16_s13 }
   0x4   :  { %p252_p1 = scmp.lt.u32.totalorder %s248_s16, %s394_s0 }
   0x6   :  { %p254_p2 = pnand %p252_p1, %p249_p0 }
   0x8   :  { %257 = shalt.err (!%p254_p2)
}
   0x9   :  { %s258_s21 = scalar_lea.vmem %s17_s13, 256  ;;  %p263_p4 = scmp.lt.s32.totalorder %s17_s13, %s17_s13 }
   0xa   :  { %p259_p3 = scmp.ne.s32.totalorder %s17_s13, %s258_s21  ;;  %p264_p5 = scmp.lt.s32.totalorder %s258_s21, %s258_s21 }
   0xc   :  { %p265_p6 = por %p264_p5, %p263_p4 }
   0xe   :  { %p266_p7 = pnand %p265_p6, %p259_p3 }
  0x10   :  { %269 = shalt.err (!%p266_p7)
}
  0x11   :  { %s321_s22 = smov 128   ;;  %s322_s23 = smov 8  }
  0x12   :  { %22 = dma.hbm_to_vmem [thread:$0]  %s394_s0, 256, %s17_s13, [#allocation3], %s321_s22, %s321_s22, %s322_s23  }
  0x13   :  { %s323_s26 = smov [#allocation5]   ;;  %s270_s30 = scalar_lea.hbm %s395_s1, 1024 }
  0x14   :  { %s28_s27 = sshll.u32 %s323_s26, 4  ;;  %p271_p8 = scmp.ne.s32.totalorder %s395_s1, %s270_s30  ;;  %s29_s27 = int_to_ptr.vmem [resolvable:$true] %s28_s27 }
  0x15   :  { %p274_p9 = scmp.lt.u32.totalorder %s270_s30, %s395_s1 }
  0x17   :  { %p276_p10 = pnand %p274_p9, %p271_p8 }
  0x19   :  { %279 = shalt.err (!%p276_p10)
}
  0x1a   :  { %s280_s8 = scalar_lea.vmem %s29_s27, 1024  ;;  %p285_p12 = scmp.lt.s32.totalorder %s29_s27, %s29_s27 }
  0x1b   :  { %p281_p11 = scmp.ne.s32.totalorder %s29_s27, %s280_s8  ;;  %p286_p13 = scmp.lt.s32.totalorder %s280_s8, %s280_s8 }
  0x1d   :  { %p287_p0 = por %p286_p13, %p285_p12 }
  0x1f   :  { %p288_p1 = pnand %p287_p0, %p281_p11 }
  0x21   :  { %291 = shalt.err (!%p288_p1)
}
  0x22   :  { %s324_s0 = smov 64   ;;  %s325_s9 = smov 4  }
  0x23   :  { %34 = dma.hbm_to_vmem [thread:$0]  %s395_s1, 1024, %s29_s27, [#allocation6], %s324_s0, %s324_s0, %s325_s9  }
  0x24   :  { %314 = dma.done.wait [#allocation3], 256  }
  0x25   :  { %315 = vsyncadd [#allocation3], 4294967040 }
  0x26   :  { %316 = dma.done.wait [#allocation6], 1024  }
  0x27   :  { %317 = vsyncadd [#allocation6], 4294966272  ;;  %v326_v0 = vmov 0.0   ;;  %vm327_vm0 = vmmov 0   ;;  %v236_v1 = vld [vmem:[#allocation5] sm:$0xff]   ;;  %v237_v2 = vld [vmem:[#allocation5 + $0x8] sm:$0xff]  }
  0x28   :  { %207 = vmatprep.subr.bf16.mxu0 %v326_v0  ;;  %223 = vmatprep.mubr.msk.bf16.mxu0 %vm327_vm0, %v326_v0  ;;  %v238_v3 = vld [vmem:[#allocation5 + $0x10] sm:$0xff]   ;;  %v239_v4 = vld [vmem:[#allocation5 + $0x18] sm:$0xff]   ;;  %v240_v5 = vld [vmem:[#allocation5 + $0x20] sm:$0xff]   ;;  %s328_s13 = smov [#allocation7]  }
  0x29   :  { %208 = vmatpush3.bf16.msra.mxu0 %v236_v1  ;;  %v241_v6 = vld [vmem:[#allocation5 + $0x28] sm:$0xff]   ;;  %v242_v7 = vld [vmem:[#allocation5 + $0x30] sm:$0xff]   ;;  %v243_v8 = vld [vmem:[#allocation5 + $0x38] sm:$0xff]   ;;  %s176_s14 = sshll.u32 %s328_s13, 4  ;;  %s177_s14 = int_to_ptr.vmem [resolvable:$true] %s176_s14 }
  0x2a   :  { %209 = vmatprep.subr.bf16.mxu0 %v326_v0  ;;  %v44_v9 = vld [vmem:[#allocation2] sm:$0xff]  ;;  %v45_v10 = vld [vmem:[#allocation2 + $0x8] sm:$0xff]  ;;  %p297_p3 = scmp.lt.s32.totalorder %s177_s14, %s177_s14 }
  0x2b   :  { %v46_v11 = vpack.c.bf16 %v45_v10, %v44_v9  ;;  %v189_v12 = vld [vmem:[%s396_s2] ss:$0 sm:$0xff]  ;;  %s292_s2 = scalar_lea.vmem %s177_s14, 256 }
  0x2c   :  { %p293_p2 = scmp.ne.s32.totalorder %s177_s14, %s292_s2  ;;  %p298_p4 = scmp.lt.s32.totalorder %s292_s2, %s292_s2 }
  0x2d   :  { %210 = vmatpush3.bf16.msra.mxu0 %v237_v2 }
  0x2e   :  { %211 = vmatprep.subr.bf16.mxu0 %v326_v0  ;;  %p299_p5 = por %p298_p4, %p297_p3 }
  0x30   :  { %p300_p6 = pnand %p299_p5, %p293_p2 }
  0x31   :  { %212 = vmatpush3.bf16.msra.mxu0 %v238_v3 }
  0x32   :  { %213 = vmatprep.subr.bf16.mxu0 %v326_v0 }
  0x35   :  { %214 = vmatpush3.bf16.msra.mxu0 %v239_v4 }
  0x36   :  { %215 = vmatprep.subr.bf16.mxu0 %v326_v0 }
  0x39   :  { %216 = vmatpush3.bf16.msra.mxu0 %v240_v5 }
  0x3a   :  { %217 = vmatprep.subr.bf16.mxu0 %v326_v0 }
  0x3d   :  { %218 = vmatpush3.bf16.msra.mxu0 %v241_v6 }
  0x3e   :  { %219 = vmatprep.subr.bf16.mxu0 %v326_v0 }
  0x41   :  { %220 = vmatpush3.bf16.msra.mxu0 %v242_v7 }
  0x42   :  { %221 = vmatprep.subr.bf16.mxu0 %v326_v0 }
  0x45   :  { %222 = vmatpush3.bf16.msra.mxu0 %v243_v8 }
  0x48   :  { %224 = vmatmul.mubr.bf16.vlgmr.msra.gmra.mrb[0].mxu0 %v46_v11 }
 0x11b   :  { %v152_v13 = vpop.f32.mrb[0].mxu0 }
 0x11c   :  { %v153_v14 = vadd.f32 %v189_v12, %v152_v13  ;;  %v225_v15 = vpop.f32.mrb[1].mxu0 }
 0x11d   :  { %v155_v16 = vpop.f32.mrb[2].mxu0 }
 0x11e   :  { %v161_v17 = vmul.f32 0.70710677, %v153_v14  ;;  %v156_v18 = vadd.f32 %v189_v12, %v155_v16  ;;  %v226_v19 = vpop.f32.mrb[3].mxu0  ;;  %v159_v22 = vmul.f32 0.5, %v153_v14 }
 0x120   :  { %244 = verf.f32 %v161_v17  ;;  %v162_v20 = vmul.f32 0.70710677, %v156_v18  ;;  %v160_v26 = vmul.f32 0.5, %v156_v18 }
 0x122   :  { %246 = verf.f32 %v162_v20 }
 0x12a   :  { %v245_v21 = vpop.eup %244 }
 0x12b   :  { %v165_v23 = vadd.f32 1.0, %v245_v21 }
 0x12c   :  { %v247_v24 = vpop.eup %246 }
 0x12d   :  { %v167_v25 = vmul.f32 %v165_v23, %v159_v22  ;;  %v166_v27 = vadd.f32 1.0, %v247_v24 }
 0x12f   :  { %169 = vst [vmem:[#allocation7] sm:$0xff] %v167_v25  ;;  %v168_v28 = vmul.f32 %v166_v27, %v160_v26 }
 0x131   :  { %170 = vst [vmem:[#allocation7 + $0x8] sm:$0xff] %v168_v28 }
 0x132   :  { %303 = shalt.err (!%p300_p6)
}
 0x133   :  { %s304_s17 = scalar_lea.hbm %s397_s3, 256 }
 0x134   :  { %p305_p7 = scmp.ne.s32.totalorder %s397_s3, %s304_s17  ;;  %p308_p8 = scmp.lt.u32.totalorder %s304_s17, %s397_s3 }
 0x136   :  { %p310_p9 = pnand %p308_p8, %p305_p7 }
 0x138   :  { %313 = shalt.err (!%p310_p9)
}
 0x139   :  { %182 = dma.vmem_to_hbm [thread:$0]  %s177_s14, 256, %s397_s3, [#allocation4], %s321_s22, %s321_s22, %s322_s23  }
 0x13a   :  { %318 = dma.done.wait [#allocation4], 256  }
 0x13b   :  { %319 = vsyncadd [#allocation4], 4294967040 }
 0x13c   :  { %186 = vsyncpa [#allocation3], 1 }
 0x13d   :  { %187 = vsyncpa [#allocation6], 1 }
 0x13e   :  { %188 = vsyncpa [#allocation4], 1 }

</bundles_post_ra>
